<compile_context>
chip_gen: v6e
topology: v6e:2x2x1
jax: 0.10.0
libtpu: 0.0.40
codegen_flags: <defaults>
</compile_context>

<pallas_src>
import functools

import jax
import jax.numpy as jnp
from jax import lax
from jax.experimental import pallas as pl
from jax.experimental.pallas import tpu as pltpu


def _vmem_limit_bytes():
    """~3/4 of physical VMEM, capped at 100 MiB (per-generation, not hardcoded)."""
    cap = 128 * 1024 * 1024
    try:
        cap = int(pltpu.get_tpu_info().vmem_capacity_bytes)
    except Exception:
        pass
    return min((cap * 3) // 4, 100 * 1024 * 1024)


def _pick_row_tile(n):
    """Largest multiple-of-8 tile dividing n, preferring >= 2 grid steps."""
    fallback = n
    seen = False
    for c in (2048, 1024, 512, 256, 128, 64, 32, 16, 8):
        if n % c == 0:
            if n // c >= 2:
                return c
            if not seen:
                fallback, seen = c, True
    return fallback


def _pick_q_tile(s):
    """Query tile: bounds the (TQ, S) score block, prefers >= 2 steps."""
    best = s
    for c in (512, 256, 128, 64, 32, 16, 8):
        if s % c == 0:
            if s // c >= 2:
                return c
            if best == s:
                best = c
    return best


# ---------------------------------------------------------------------------
# Kernel 1: fused q/k/v projection.
#   grid = (BS // TM,).  One (TM, E) x (E, 3E) NN matmul (weight is fused and
#   pre-transposed at trace time), written out as three (TM, E) planes of a
#   (3, BS, E) slab.
# ---------------------------------------------------------------------------
def _proj_kernel(x_ref, w_ref, o_ref, *, embed_dim):
    E = embed_dim
    qkv = jnp.dot(x_ref[...], w_ref[...], preferred_element_type=jnp.float32)
    o_ref[0] = qkv[:, 0 * E:1 * E].astype(o_ref.dtype)   # q plane
    o_ref[1] = qkv[:, 1 * E:2 * E].astype(o_ref.dtype)   # k plane
    o_ref[2] = qkv[:, 2 * E:3 * E].astype(o_ref.dtype)   # v plane
    # TODO(synk): mark the weight BlockSpec pipeline_mode=pl.Buffered(1) once
    # single-buffered constant inputs are verified on the target jax build.


# ---------------------------------------------------------------------------
# Kernel 2: attention.  grid = (B, S // TQ); all heads unrolled in-program,
# each head's result stored directly into its output lane slice.
# ---------------------------------------------------------------------------
def _attn_kernel(g_ref, q_ref, k_ref, v_ref, o_ref, *, num_heads, head_dim,
                 mxu_dtype=None):
    H, D = num_heads, head_dim

    q_all = q_ref[0, 0]          # (TQ, E)
    k_all = k_ref[0, 0]          # (S,  E)
    v_all = v_ref[0, 0]          # (S,  E)

    # MXU operand dtype: input dtype by default (exact for f32 inputs); pass
    # mxu_dtype=jnp.bfloat16 on v6e/v7x to hit the bf16 MXU peak.
    cdt = q_all.dtype if mxu_dtype is None else mxu_dtype
    g = g_ref[0]                                  # f32 scalar from SMEM
    eps2 = jnp.float32(1e-24)                     # (F.normalize eps = 1e-12) ** 2
    dn_nt = (((1,), (1,)), ((), ()))              # contract last dims (Q @ K^T)

    # TODO(synk): for head_dim < 128, a head-padded (lane-aligned) qkv layout
    # would avoid per-head cross-lane slices; kept simple here.
    for h in range(H):                            # static unroll; H is small
        sl = slice(h * D, (h + 1) * D)
        qh = q_all[:, sl].astype(jnp.float32)     # (TQ, D)
        kh = k_all[:, sl].astype(jnp.float32)     # (S,  D)
        vh = v_all[:, sl].astype(cdt)             # (S,  D)

        # F.normalize(p=2, dim=-1): x * rsqrt(max(sumsq, eps^2)); g folded into q.
        q_inv = lax.rsqrt(jnp.maximum(jnp.sum(qh * qh, axis=-1, keepdims=True), eps2))
        k_inv = lax.rsqrt(jnp.maximum(jnp.sum(kh * kh, axis=-1, keepdims=True), eps2))
        qn = (qh * (q_inv * g)).astype(cdt)
        kn = (kh * k_inv).astype(cdt)

        scores = lax.dot_general(qn, kn, dn_nt,
                                 preferred_element_type=jnp.float32)   # (TQ, S)
        m = jnp.max(scores, axis=-1, keepdims=True)
        p = jnp.exp(scores - m)
        # Exact reciprocal for parity with torch softmax (approx=True would be
        # a marginal EUP win if tolerance allows).
        p = p * pl.reciprocal(jnp.sum(p, axis=-1, keepdims=True), approx=False)
        # TODO(synk): attention-weight dropout is eval-mode identity; training
        # mode would need pltpu.prng_seed/prng_random_bits here.
        out_h = jnp.dot(p.astype(cdt), vh, preferred_element_type=jnp.float32)
        o_ref[0, :, sl] = out_h.astype(o_ref.dtype)     # per-head direct store


def mhsa_forward(x, wq, wk, wv, g_scale, num_heads, mxu_dtype=None):
    """Forward pass equivalent to MHSA.forward(x) with attn_mask=None,
    key_padding_mask=None, need_weights=False (returns only attn_output)."""
    B, S, E = x.shape
    H = num_heads
    D = E // H
    BS = B * S

    vmem_limit = _vmem_limit_bytes()
    op_dtype = x.dtype if mxu_dtype is None else mxu_dtype

    # Fused, pre-transposed weight (trace-time constant work): x @ W == x @ [wq|wk|wv]^T
    w_fused = jnp.concatenate([wq.T, wk.T, wv.T], axis=1).astype(op_dtype)   # (E, 3E)
    x2 = x.reshape(BS, E).astype(op_dtype)

    # --- fused q/k/v projection --------------------------------------------
    TM = _pick_row_tile(BS)
    qkv3 = pl.pallas_call(
        functools.partial(_proj_kernel, embed_dim=E),
        out_shape=jax.ShapeDtypeStruct((3, BS, E), x.dtype),
        grid=(BS // TM,),
        in_specs=[
            pl.BlockSpec((TM, E), lambda i: (i, 0)),
            pl.BlockSpec((E, 3 * E), lambda i: (0, 0)),      # weight resident
        ],
        out_specs=pl.BlockSpec((3, TM, E), lambda i: (0, i, 0)),
        compiler_params=pltpu.CompilerParams(
            dimension_semantics=("parallel",),
            vmem_limit_bytes=vmem_limit),
    )(x2, w_fused)

    qkv3 = qkv3.reshape(3, B, S, E)   # free reshape (split leading dim)

    # --- attention -----------------------------------------------------------
    # TODO(synk): on v5e (memory-bound) the projection could be fused into this
    # kernel to skip the (3,B,S,E) HBM round-trip; kept separate for clarity.
    TQ = _pick_q_tile(S)
    g = jnp.asarray(g_scale, jnp.float32).reshape(1)
    out = pl.pallas_call(
        functools.partial(_attn_kernel, num_heads=H, head_dim=D,
                          mxu_dtype=mxu_dtype),
        out_shape=jax.ShapeDtypeStruct((B, S, E), x.dtype),
        grid=(B, S // TQ),
        in_specs=[
            pl.BlockSpec(memory_space=pltpu.MemorySpace.SMEM),           # g_scale
            pl.BlockSpec((1, 1, TQ, E), lambda b, qi: (0, b, qi, 0)),    # q tile
            pl.BlockSpec((1, 1, S, E), lambda b, qi: (1, b, 0, 0)),      # k (resident over qi)
            pl.BlockSpec((1, 1, S, E), lambda b, qi: (2, b, 0, 0)),      # v (resident over qi)
        ],
        out_specs=pl.BlockSpec((1, TQ, E), lambda b, qi: (b, qi, 0)),
        compiler_params=pltpu.CompilerParams(
            dimension_semantics=("parallel", "parallel"),
            vmem_limit_bytes=vmem_limit),
    )(g, qkv3, qkv3, qkv3)
    # TODO(synk): for very long sequences (S >> a few k) flash-tile the KV axis
    # (extra "arbitrary" grid axis + m/l/acc scratch) to bound the (TQ, S) block.
    return out


def _mhsa_reference(x, wq, wk, wv, g_scale, num_heads):
    """Pure-JAX reference mirroring the PyTorch module (eval mode)."""
    B, S, E = x.shape
    H = num_heads
    D = E // H
    q = x @ wq.T
    k = x @ wk.T
    v = x @ wv.T

    def split(t):
        return t.reshape(B, S, H, D).transpose(0, 2, 1, 3)

    q, k, v = split(q), split(k), split(v)

    def l2n(t):
        n = jnp.sqrt(jnp.sum(t * t, axis=-1, keepdims=True))
        return t / jnp.maximum(n, 1e-12)

    q, k = l2n(q), l2n(k)
    s = g_scale * jnp.einsum("bhqd,bhkd->bhqk", q, k)
    p = jax.nn.softmax(s, axis=-1)
    o = jnp.einsum("bhqk,bhkd->bhqd", p, v)
    return o.transpose(0, 2, 1, 3).reshape(B, S, E)


if __name__ == "__main__":
    # Small shapes consistent with the module (embed_dim divisible by num_heads).
    B, S, E, H = 2, 8, 32, 4
    D = E // H

    key = jax.random.PRNGKey(0)
    kx, kq, kk, kv = jax.random.split(key, 4)

    # Linear-like uniform init in [-1/sqrt(E), 1/sqrt(E)], bias=False as in the module.
    bound = 1.0 / (E ** 0.5)
    wq = jax.random.uniform(kq, (E, E), jnp.float32, -bound, bound)
    wk = jax.random.uniform(kk, (E, E), jnp.float32, -bound, bound)
    wv = jax.random.uniform(kv, (E, E), jnp.float32, -bound, bound)
    # PyTorch init: d_k = head_dim**-0.5; g_scale = 1.0 / d_k = sqrt(head_dim)
    g_scale = float(D ** 0.5)

    x = jax.random.normal(kx, (B, S, E), jnp.float32)

    out = mhsa_forward(x, wq, wk, wv, g_scale, num_heads=H)
    jax.block_until_ready(out)
    assert out.shape == (B, S, E)

    ref = _mhsa_reference(x, wq, wk, wv, g_scale, H)
    err = float(jnp.max(jnp.abs(out - ref)))
    assert err < 1e-3, f"max abs error vs reference: {err}"

    print("KERNEL_OK")
</pallas_src>

<mosaic_0001>
module attributes {stable_mosaic.version = 11 : i64} {
  func.func @_proj_kernel(%arg0: i32, %arg1: memref<8x32xf32, #tpu.memory_space<vmem>>, %arg2: memref<32x96xf32, #tpu.memory_space<vmem>>, %arg3: memref<3x8x32xf32, #tpu.memory_space<vmem>>) attributes {dimension_semantics = [#tpu.dimension_semantics<parallel>], iteration_bounds = array<i64: 2>, scalar_prefetch = 0 : i64, scratch_operands = 0 : i64, tpu.core_type = #tpu.core_type<tc>, window_params = [{transform_indices = @transform_0, window_bounds = array<i64: 8, 32>}, {pipeline_mode = #tpu.pipeline_mode<synchronous>, transform_indices = @transform_1, window_bounds = array<i64: 32, 96>}, {transform_indices = @transform_2, window_bounds = array<i64: 3, 8, 32>}]} {
    %c0 = arith.constant 0 : index
    %c0_0 = arith.constant 0 : index
    %0 = vector.load %arg1[%c0, %c0_0] : memref<8x32xf32, #tpu.memory_space<vmem>>, vector<8x32xf32>
    %c0_1 = arith.constant 0 : index
    %c0_2 = arith.constant 0 : index
    %1 = vector.load %arg2[%c0_1, %c0_2] : memref<32x96xf32, #tpu.memory_space<vmem>>, vector<32x96xf32>
    %cst = arith.constant dense<0.000000e+00> : vector<8x96xf32>
    %2 = tpu.matmul %0, %1, %cst {dimension_numbers = #tpu.dot_dimension_numbers<[1], [0], [0], [1], [0, 0, 1, 1], [], []>} : vector<8x32xf32>, vector<32x96xf32>, vector<8x96xf32> -> vector<8x96xf32>
    %3 = vector.extract_strided_slice %2 {offsets = [0, 0], sizes = [8, 32], strides = [1, 1]} : vector<8x96xf32> to vector<8x32xf32>
    %c0_3 = arith.constant 0 : index
    %c0_4 = arith.constant 0 : index
    %c0_5 = arith.constant 0 : index
    %4 = vector.load %arg3[%c0_3, %c0_4, %c0_5] : memref<3x8x32xf32, #tpu.memory_space<vmem>>, vector<1x8x32xf32>
    %5 = vector.shape_cast %4 : vector<1x8x32xf32> to vector<8x32xf32>
    %6 = vector.shape_cast %3 : vector<8x32xf32> to vector<1x8x32xf32>
    tpu.vector_store %arg3[%c0_3, %c0_4, %c0_5], %6 {strides = array<i32>} : memref<3x8x32xf32, #tpu.memory_space<vmem>>, vector<1x8x32xf32>,
    %7 = vector.extract_strided_slice %2 {offsets = [0, 32], sizes = [8, 32], strides = [1, 1]} : vector<8x96xf32> to vector<8x32xf32>
    %c1 = arith.constant 1 : index
    %c0_6 = arith.constant 0 : index
    %c0_7 = arith.constant 0 : index
    %8 = vector.load %arg3[%c1, %c0_6, %c0_7] : memref<3x8x32xf32, #tpu.memory_space<vmem>>, vector<1x8x32xf32>
    %9 = vector.shape_cast %8 : vector<1x8x32xf32> to vector<8x32xf32>
    %10 = vector.shape_cast %7 : vector<8x32xf32> to vector<1x8x32xf32>
    tpu.vector_store %arg3[%c1, %c0_6, %c0_7], %10 {strides = array<i32>} : memref<3x8x32xf32, #tpu.memory_space<vmem>>, vector<1x8x32xf32>,
    %11 = vector.extract_strided_slice %2 {offsets = [0, 64], sizes = [8, 32], strides = [1, 1]} : vector<8x96xf32> to vector<8x32xf32>
    %c2 = arith.constant 2 : index
    %c0_8 = arith.constant 0 : index
    %c0_9 = arith.constant 0 : index
    %12 = vector.load %arg3[%c2, %c0_8, %c0_9] : memref<3x8x32xf32, #tpu.memory_space<vmem>>, vector<1x8x32xf32>
    %13 = vector.shape_cast %12 : vector<1x8x32xf32> to vector<8x32xf32>
    %14 = vector.shape_cast %11 : vector<8x32xf32> to vector<1x8x32xf32>
    tpu.vector_store %arg3[%c2, %c0_8, %c0_9], %14 {strides = array<i32>} : memref<3x8x32xf32, #tpu.memory_space<vmem>>, vector<1x8x32xf32>,
    return
  }
  func.func @transform_0(%arg0: i32) -> (i32, i32) {
    %c0_i32 = arith.constant 0 : i32
    %c0_i32_0 = arith.constant 0 : i32
    return %arg0, %c0_i32 : i32, i32
  }
  func.func @transform_1(%arg0: i32) -> (i32, i32) {
    %c0_i32 = arith.constant 0 : i32
    %c0_i32_0 = arith.constant 0 : i32
    %c0_i32_1 = arith.constant 0 : i32
    return %c0_i32, %c0_i32_0 : i32, i32
  }
  func.func @transform_2(%arg0: i32) -> (i32, i32, i32) {
    %c0_i32 = arith.constant 0 : i32
    %c0_i32_0 = arith.constant 0 : i32
    %c0_i32_1 = arith.constant 0 : i32
    return %c0_i32, %arg0, %c0_i32_0 : i32, i32, i32
  }
}

</mosaic_0001>

<bundles_post_ra>
// kernel: tpu_custom_call.1
= control target key start
LH: loop header
LB: loop body
LE: loop exit
PB: predicated region body
PF: predicated region fallthrough
CT: control target
= control target key end

     0   :  { %7 = vsyncpa [#allocation3], 0  ;;  %s783_s0 = inlined_call_operand.hbm [shape: f32[16,32], index: 0, kind: input, shape index: {}]   ;;  %s784_s1 = inlined_call_operand.hbm [shape: f32[32,96], index: 1, kind: input, shape index: {}]   ;;  %s785_s2 = inlined_call_operand.hbm [shape: f32[3,16,32], index: 2, kind: output, shape index: {}]  }
   0x1   :  { %9 = vsyncpa [#allocation3 + $0x1], 0 }
   0x2   :  { %10 = vsyncpa [#allocation6], 0 }
   0x3   :  { %11 = vsyncpa [#allocation4], 0 }
   0x4   :  { %13 = vsyncpa [#allocation4 + $0x1], 0  ;;  %s610_s9 = smov 0   ;;  %s612_s10 = smov 0  }
   0x5   :  { %s614_s11 = smov 0   ;;  %s616_s12 = smov 0  }
   0x6 LB: > { %s631_s13 = sadd.s32 4294967295, %s581_s12   ;;  %s361_s14 = sadd.s32 4294967294, %s581_s12   ;;  %s581_s12 = sphi %s616_s12, %s807_s12   ;;  %s577_s11 = sphi %s614_s11, %s806_s11   ;;  %s573_s10 = sphi %s612_s10, %s805_s10   ;;  %s569_s9 = sphi %s610_s9, %s804_s9  }
   0x7   : > { %p39_p0 = scmp.ne.s32.totalorder %s573_s10, %s569_s9  ;;  %p786_p1 = scmp.eq.s32.totalorder %s631_s13, 0 }
   0x8   : > { %p90_p3 = scmp.eq.s32.totalorder %s361_s14, 1  ;;  %p362_p5 = scmp.ge.s32.totalorder %s581_s12, 1 }
   0x9   : > { %p640_p4 = por %p786_p1, %p39_p0  ;;  %p97_p7 = scmp.lt.s32.totalorder %s581_s12, 3 }
   0xa   : > { %p645_p6 = por %p90_p3, %p39_p0  ;;  %s583_s18 = smov [#allocation5]  }
   0xb   : > { %s790_s15 = scalar_select %p640_p4, 1, 0 }
   0xc   : > { %s791_s16 = scalar_select %p645_p6, 1, 0 }
   0xd   : > { %p650_p8 = pnand %p362_p5, %p97_p7  ;;  %s109_s19 = sshll.u32 %s583_s18, 4  ;;  %s110_s19 = int_to_ptr.vmem [resolvable:$true] %s109_s19 }
   0xe   : > { %s664_s21 = sadd.s32 1, %s581_s12   ;;  %s26_s22 = sadd.s32 1, %s577_s11 }
   0xf   : > { %s792_s17 = scalar_select %p650_p8, 1, 0 }
  0x10   : > { %p401_p9 = pneg %p650_p8  ;;  %s23_s23 = ssub.s32 %s581_s12, %s664_s21 }
  0x11   : > { %s470_s24 = scalar_lea.vmem %s110_s19, 512  ;;  %p478_p5 = scmp.lt.s32.totalorder %s110_s19, %s110_s19 }
  0x12   : > { %p659_p11 = pnand %p401_p9, %p786_p1  ;;  %p471_p13 = scmp.ne.s32.totalorder %s110_s19, %s470_s24 }
  0x13   : > { %p479_p7 = scmp.lt.s32.totalorder %s470_s24, %s470_s24 }
  0x14   : > { %p461_p12 = pneg %p659_p11 }
  0x15   : > { %p480_p10 = por %p479_p7, %p478_p5 }
  0x16   : > { %p473_p0 = pnand %p471_p13, %p461_p12 }
  0x18   : > { %p474_p3 = pneg %p473_p0 }
  0x1a   : > { %p481_p2 = pnand %p480_p10, %p474_p3 }
  0x1c   : > { %484 = shalt.err (!%p481_p2)
}
  0x1d   : > { %s584_s25 = smov 128   ;;  %s585_s26 = smov 8  }
  0x1e   : > { %404 = dma.hbm_to_vmem [thread:$0]  (!%p659_p11), %s784_s1, 512, %s110_s19, [#allocation6], %s584_s25, %s584_s25, %s585_s26  }
  0x1f   : > { %p24_p9 = scmp.eq.s32.totalorder %s23_s23, 0  ;;  %p33_p12 = scmp.ne.s32.totalorder %s577_s11, %s573_s10 }
  0x20   : > { %p34_p10 = scmp.eq.s32.totalorder %s581_s12, 0  ;;  %p414_p2 = scmp.lt.s32.totalorder %s581_s12, 2 }
  0x21   : > { %s681_s29 = scalar_select %p24_p9, %s577_s11, %s26_s22  }
  0x22   : > { %p35_p13 = por %p34_p10, %p33_p12  ;;  %p794_p0 = scmp.eq.s32.totalorder %s631_s13, 1 }
  0x23   : > { %s123_s3 = sand.u32 1, %s577_s11   ;;  %s366_s4 = sshll.u32 %s581_s12, 7 }
  0x24   : > { %p685_p3 = por %p794_p0, %p33_p12  ;;  %s365_s5 = sshll.u32 %s123_s3, 3 }
  0x25   : > { %s694_s8 = scalar_lea.hbm %s783_s0, %s366_s4  ;;  %s127_s14 = scalar_lea.vmem [#allocation2], %s365_s5 }
  0x26   : > { %s795_s30 = scalar_select %p685_p3, 1, 0 }
  0x27   : > { %s134_s18 = sshll.u32 %s127_s14, 4  ;;  %p696_p11 = pnand %p414_p2, %p35_p13  ;;  %s135_s18 = int_to_ptr.vmem [resolvable:$true] %s134_s18 }
  0x28   : > { %s124_s20 = scalar_lea.sflag [#allocation3], %s123_s3  ;;  %s485_s22 = scalar_lea.hbm %s694_s8, 128 }
  0x29   : > { %p486_p5 = scmp.ne.s32.totalorder %s694_s8, %s485_s22  ;;  %p487_p7 = pneg %p696_p11 }
  0x2a   : > { %s490_s25 = scalar_lea.hbm %s783_s0, 256  ;;  %p491_p10 = scmp.lt.s32.totalorder %s694_s8, %s783_s0 }
  0x2b   : > { %p488_p9 = pnand %p487_p7, %p486_p5  ;;  %p492_p2 = scmp.lt.s32.totalorder %s490_s25, %s485_s22 }
  0x2d   : > { %p489_p12 = pneg %p488_p9  ;;  %p493_p13 = por %p492_p2, %p491_p10 }
  0x2f   : > { %p494_p0 = pnand %p493_p13, %p489_p12 }
  0x31   : > { %497 = shalt.err (!%p494_p0)
}
  0x32   : > { %s498_s28 = scalar_lea.vmem %s135_s18, 128  ;;  %s586_s3 = smov [#allocation2]  }
  0x33   : > { %p499_p1 = scmp.ne.s32.totalorder %s135_s18, %s498_s28  ;;  %s503_s4 = sshll.u32 %s586_s3, 4  ;;  %s504_s4 = int_to_ptr.vmem [resolvable:$false] %s503_s4 }
  0x34   : > { %s505_s5 = scalar_lea.vmem %s504_s4, 256  ;;  %p506_p5 = scmp.lt.s32.totalorder %s135_s18, %s504_s4 }
  0x35   : > { %p501_p6 = pnand %p499_p1, %p487_p7  ;;  %p507_p9 = scmp.lt.s32.totalorder %s505_s5, %s498_s28 }
  0x37   : > { %p502_p3 = pneg %p501_p6  ;;  %p508_p4 = por %p507_p9, %p506_p5 }
  0x39   : > { %p509_p8 = pnand %p508_p4, %p502_p3 }
  0x3b   : > { %512 = shalt.err (!%p509_p8)
}
  0x3c   : > { %408 = dma.hbm_to_vmem [thread:$0]  (!%p696_p11), %s694_s8, 128, %s135_s18, %s124_s20  }
  0x3d   : > { %p797_p12 = scmp.ne.s32.totalorder %s792_s17, 0 }
  0x3e   : > { %s717_s6 = sand.u32 (!%p797_p12), 1, %s573_s10   ;;  %p798_p1 = scmp.ne.s32.totalorder (!%p797_p12), %s790_s15, 0 }
  0x3f   : > { %143 = sbr.rel (%p797_p12) target bundleno = 408 (0x198), region = 28  ;;  %s368_s7 = sshll.u32 (!%p797_p12), %s717_s6, 3 }
  0x40   : > { %s146_s14 = scalar_lea.sflag (!%p797_p12), [#allocation3], %s717_s6  ;;  %s149_s22 = scalar_lea.vmem (!%p797_p12), [#allocation2], %s368_s7 }
  0x44   : > { %556 = dma.done.wait (%p798_p1), %s146_s14, 128  }
  0x45   : > { %558 = vsyncadd (%p798_p1), %s146_s14, 4294967168  ;;  %p799_p4 = scmp.eq.s32.totalorder %s631_s13, 0 }
  0x47   : > { %560 = dma.done.wait (%p799_p4), [#allocation6], 512   ;;  %p800_p6 = pmov %p799_p4 }
  0x48   : > { %v587_v0 = vmov 0.0   ;;  %vm588_vm0 = vmmov 0   ;;  %v178_v1 = vld [vmem:[#allocation5 + $0x18] sm:$0xff]  ;;  %v177_v2 = vld [vmem:[#allocation5 + $0x10] sm:$0xff]  ;;  %v176_v3 = vld [vmem:[#allocation5 + $0x8] sm:$0xff]  ;;  %vm179_vm1 = vcmask 261120  }
  0x49   : > { %562 = vsyncadd (%p800_p6), [#allocation6], 4294966784  ;;  %381 = vmatprep.subr.mxu0 %v587_v0  ;;  %389 = vmatprep.mubr.msk.f32.mxu0 %vm588_vm0, %v587_v0  ;;  %v175_v4 = vld [vmem:[#allocation5] sm:$0xff]  ;;  %v174_v5 = vld [vmem:[%s149_s22] sm:$0xff]  ;;  %s392_s15 = smul.u32 24, %s717_s6  ;;  %s589_s8 = smov 96  }
  0x4a   : > { %382 = vmatpush3.msra.mxu0 %v178_v1  ;;  %s590_s18 = smov 64   ;;  %s373_s20 = sshll.u32 %s631_s13, 7 }
  0x4b   : > { %383 = vmatprep.subr.mxu0 %v587_v0  ;;  %s173_s17 = scalar_lea.vmem [#allocation7], %s392_s15  ;;  %s739_s25 = scalar_lea.hbm %s785_s2, %s373_s20 }
  0x4c   : > { %384 = vmatpush3.msra.mxu0 %v177_v2  ;;  %s278_s19 = sshll.u32 %s173_s17, 4  ;;  %s266_s26 = scalar_lea.sflag [#allocation4], %s717_s6  ;;  %s733_s19 = int_to_ptr.vmem [resolvable:$true] %s278_s19 }
  0x4d   : > { %385 = vmatprep.subr.mxu0 %v587_v0  ;;  %s513_s27 = scalar_lea.vmem %s733_s19, 384  ;;  %p801_p3 = scmp.ne.s32.totalorder %s795_s30, 0 }
  0x4e   : > { %386 = vmatpush3.msra.mxu0 %v176_v3  ;;  %p514_p8 = scmp.ne.s32.totalorder %s733_s19, %s513_s27  ;;  %s591_s13 = smov [#allocation7]  }
  0x4f   : > { %387 = vmatprep.subr.mxu0 %v587_v0  ;;  %s517_s28 = sshll.u32 %s591_s13, 4  ;;  %s518_s28 = int_to_ptr.vmem [resolvable:$false] %s517_s28 }
  0x50   : > { %388 = vmatpush3.msra.mxu0 %v175_v4  ;;  %p515_p11 = pnand %p514_p8, %p801_p3  ;;  %s519_s3 = scalar_lea.vmem %s518_s28, 768 }
  0x51   : > { %390 = vmatmul.mubr.msk.f32.vlgmr.msra.gmra.mxu0 %vm179_vm1, %v174_v5  ;;  %p520_p10 = scmp.lt.s32.totalorder %s733_s19, %s518_s28  ;;  %p521_p2 = scmp.lt.s32.totalorder %s519_s3, %s513_s27 }
  0x52   : > { %p516_p7 = pneg %p515_p11 }
  0x53   : > { %p522_p13 = por %p521_p2, %p520_p10 }
  0x55   : > { %p523_p0 = pnand %p522_p13, %p516_p7 }
 0x111   : > { %v249_v6 = vpop.f32.mrf.mxu0 }
 0x112   : > { %253 = vst.msk [vmem:[%s173_s17] sm:$0xff] %vm179_vm1, %v249_v6  ;;  %255 = vrot.lane.b32.xlu0 %v249_v6, %s589_s8 }
 0x113   : > { %v391_v7 = vpop.f32.mrf.mxu0 }
 0x116   : > { %260 = vrot.lane.b32.xlu0 %v249_v6, %s590_s18 }
 0x184   : > { %v256_v8 = vpop.permute.xlu0 %255 }
 0x185   : > { %371 = vst.msk [vmem:[%s173_s17 + $0x8] sm:$0xff] %vm179_vm1, %v256_v8 }
 0x188   : > { %v261_v9 = vpop.permute.xlu0 %260 }
 0x189   : > { %372 = vst.msk [vmem:[%s173_s17 + $0x10] sm:$0xff] %vm179_vm1, %v261_v9 }
 0x18a   : > { %526 = shalt.err (!%p523_p0)
}
 0x18b   : > { %s527_s4 = scalar_lea.hbm %s739_s25, 384  ;;  %s531_s14 = scalar_lea.hbm %s785_s2, 768 }
 0x18c   : > { %p528_p5 = scmp.ne.s32.totalorder %s739_s25, %s527_s4  ;;  %p532_p1 = scmp.lt.s32.totalorder %s739_s25, %s785_s2 }
 0x18d   : > { %p533_p4 = scmp.lt.s32.totalorder %s531_s14, %s527_s4 }
 0x18e   : > { %p529_p9 = pnand %p528_p5, %p801_p3 }
 0x18f   : > { %p534_p6 = por %p533_p4, %p532_p1 }
 0x190   : > { %p530_p12 = pneg %p529_p9 }
 0x192   : > { %p535_p8 = pnand %p534_p6, %p530_p12 }
 0x194   : > { %538 = shalt.err (!%p535_p8)
}
 0x195   : > { %s592_s17 = smov 128   ;;  %s593_s8 = smov 256  }
 0x196   : > { %s594_s18 = smov 8  }
 0x197   : > { %399 = dma.vmem_to_hbm [thread:$0]  (%p801_p3), %s733_s19, 384, %s739_s25, %s266_s26, %s592_s17, %s593_s8, %s594_s18  }
 0x198 PF: > { %s293_s20 = sand.u32 1, %s569_s9   ;;  %p802_p11 = scmp.ne.s32.totalorder %s791_s16, 0 }
 0x199   : > { %p803_p7 = scmp.ge.s32.totalorder %s581_s12, 2  ;;  %s294_s23 = scalar_lea.sflag [#allocation4], %s293_s20 }
 0x19b   : > { %p410_p10 = pnand %p803_p7, %p802_p11 }
 0x19d   : > { %p411_p2 = pneg %p410_p10 }
 0x19f   : > { %564 = dma.done.wait (%p411_p2), %s294_s23, 384  }
 0x1a0   : > { %566 = vsyncadd (%p411_p2), %s294_s23, 4294966912  ;;  %p16_p13 = scmp.ge.s32.totalorder %s664_s21, 4   ;;  %s804_s9 = smov %s573_s10 }
 0x1a1   : > { %s805_s10 = smov %s577_s11  ;;  %s806_s11 = smov %s681_s29 }
 0x1a2   : > { %s807_s12 = smov %s664_s21  ;;  %18 = sbr.rel (!%p16_p13) target bundleno = 6 (0x6), region = 79 }
 0x1a7   :  { %299 = vsyncpa [#allocation3], 1 }
 0x1a8   :  { %301 = vsyncpa [#allocation3 + $0x1], 1 }
 0x1a9   :  { %302 = vsyncpa [#allocation6], 1 }
 0x1aa   :  { %303 = vsyncpa [#allocation4], 1 }
 0x1ab   :  { %305 = vsyncpa [#allocation4 + $0x1], 1 }

</bundles_post_ra>
